<compile_context>
chip_gen: v7x
topology: tpu7x:2x2x1
jax: 0.10.0
libtpu: 0.0.40
codegen_flags: <defaults>
</compile_context>

<pallas_src>
import numpy as np
import jax
import jax.numpy as jnp
from jax import lax
from jax.experimental import pallas as pl
from jax.experimental.pallas import tpu as pltpu

BN_EPS = 1e-5


# ----------------------------------------------------------------------------
# Helpers
# ----------------------------------------------------------------------------
def _pick_tm(M, block_m=1024):
    """Row tile for the 1x1 (matmul) kernels: multiple of 8, divides M, and
    (when possible) gives >= 2 grid blocks so the pipeline has more than one
    step and v7x's two TensorCores both get work."""
    cap = min(block_m, M // 2 if M >= 16 else M)
    cap = max(cap, 1)
    for t in range(cap, 0, -1):
        if M % t == 0 and (t % 8 == 0 or t == M):
            return t
    return M


def fold_bn(gamma, beta, mean, var):
    scale = gamma / jnp.sqrt(var + BN_EPS)
    bias = beta - mean * scale
    return scale[None, :].astype(jnp.float32), bias[None, :].astype(jnp.float32)


# ----------------------------------------------------------------------------
# Kernel A: 1x1 conv (as matmul) + folded BN + ReLU   (bf16 in, bf16 out)
# ----------------------------------------------------------------------------
def _conv1x1_bn_relu_kernel(x_ref, w_ref, scale_ref, bias_ref, o_ref):
    y = jnp.dot(x_ref[...], w_ref[...], preferred_element_type=jnp.float32)
    y = y * scale_ref[...] + bias_ref[...]
    o_ref[...] = jnp.maximum(y, 0.0).astype(o_ref.dtype)


def conv1x1_bn_relu(x2d, w, scale, bias, out_dtype=jnp.bfloat16, block_m=1024):
    M, Cin = x2d.shape
    Cout = w.shape[1]
    tm = _pick_tm(M, block_m)
    return pl.pallas_call(
        _conv1x1_bn_relu_kernel,
        out_shape=jax.ShapeDtypeStruct((M, Cout), out_dtype),
        grid=(M // tm,),
        in_specs=[
            pl.BlockSpec((tm, Cin), lambda i: (i, 0)),
            pl.BlockSpec((Cin, Cout), lambda i: (0, 0)),
            pl.BlockSpec((1, Cout), lambda i: (0, 0)),
            pl.BlockSpec((1, Cout), lambda i: (0, 0)),
        ],
        out_specs=pl.BlockSpec((tm, Cout), lambda i: (i, 0)),
        compiler_params=pltpu.CompilerParams(
            dimension_semantics=("parallel",)),
    )(x2d, w, scale, bias)


# ----------------------------------------------------------------------------
# Kernel B: 3x3 conv (stride=1, pad=1, groups=1) + folded BN + ReLU
#   Grid (N, n_row_chunks).  Per step the kernel gets a tr-row slab plus one
#   halo row above/below (clamped indices; zeroed at the image boundary).
#   The 9 taps are packed along channels (K = 9*Cin) and fed to one MXU
#   matmul; the dx shifts are built on the bf16 LHS with zero edge columns.
# ----------------------------------------------------------------------------
def conv3x3_bn_relu(x_nhwc, w_packed, scale, bias, out_dtype=jnp.bfloat16,
                    row_chunk=16):
    N, H, W, Cin = x_nhwc.shape
    Cout = w_packed.shape[1]
    assert w_packed.shape[0] == 9 * Cin

    # row chunk: divides H, <= row_chunk, and (if possible) >= 2 chunks/image.
    cap = max(1, min(row_chunk, H // 2 if H >= 2 else H))
    tr = next(t for t in range(cap, 0, -1) if H % t == 0)
    nc = H // tr
    nr = tr * W                       # matmul LHS rows per step

    def kernel(xm_ref, xt_ref, xb_ref, w_ref, scale_ref, bias_ref, o_ref):
        c = pl.program_id(1)
        # Halo rows; replaced with zeros at the image top/bottom (conv "same"
        # padding). The clamped BlockSpec index keeps the DMA in bounds.
        top = xt_ref[0]
        bot = xb_ref[0]
        top = jnp.where(c == 0, jnp.zeros_like(top), top)
        bot = jnp.where(c == pl.num_programs(1) - 1, jnp.zeros_like(bot), bot)
        rows = jnp.concatenate([top, xm_ref[0], bot], axis=0)   # (tr+2, W, Cin)

        # dx-shifted taps (bf16 LHS), zero columns at the left/right edges.
        zc = jnp.zeros((tr + 2, 1, Cin), rows.dtype)
        taps = (
            jnp.concatenate([zc, rows[:, :W - 1, :]], axis=1),  # x[.., w-1]
            rows,                                               # x[.., w  ]
            jnp.concatenate([rows[:, 1:, :], zc], axis=1),      # x[.., w+1]
        )

        # Pack all 9 taps along the contraction dim: K = 9*Cin, one deep MXU
        # matmul with an uninterrupted f32 accumulation (no output rolls, no
        # accumulator scratch round trips).
        lhs = jnp.concatenate(
            [taps[dx][dy:dy + tr] for dy in range(3) for dx in range(3)],
            axis=-1).reshape(nr, 9 * Cin)
        y = jnp.dot(lhs, w_ref[...], preferred_element_type=jnp.float32)
        y = y * scale_ref[...] + bias_ref[...]
        o_ref[0] = jnp.maximum(y, 0.0).reshape(tr, W, Cout).astype(o_ref.dtype)

    return pl.pallas_call(
        kernel,
        out_shape=jax.ShapeDtypeStruct((N, H, W, Cout), out_dtype),
        grid=(N, nc),
        in_specs=[
            # current row chunk
            pl.BlockSpec((1, tr, W, Cin), lambda n, c: (n, c, 0, 0)),
            # one halo row above / below (clamped; zeroed in-kernel at edges)
            pl.BlockSpec((1, 1, W, Cin),
                         lambda n, c: (n, jnp.maximum(c * tr - 1, 0), 0, 0)),
            pl.BlockSpec((1, 1, W, Cin),
                         lambda n, c: (n, jnp.minimum((c + 1) * tr, H - 1), 0, 0)),
            pl.BlockSpec((9 * Cin, Cout), lambda n, c: (0, 0)),
            pl.BlockSpec((1, Cout), lambda n, c: (0, 0)),
            pl.BlockSpec((1, Cout), lambda n, c: (0, 0)),
        ],
        out_specs=pl.BlockSpec((1, tr, W, Cout), lambda n, c: (n, c, 0, 0)),
        compiler_params=pltpu.CompilerParams(
            dimension_semantics=("parallel", "parallel")),
    )(x_nhwc, x_nhwc, x_nhwc, w_packed, scale, bias)


# ----------------------------------------------------------------------------
# Kernel C: 1x1 conv (as matmul) + folded BN + residual add + ReLU
#   bf16 activations, bf16 residual, bf16 output (HBM-bound epilogue).
# ----------------------------------------------------------------------------
def _conv1x1_bn_add_relu_kernel(x_ref, w_ref, scale_ref, bias_ref, res_ref, o_ref):
    y = jnp.dot(x_ref[...], w_ref[...], preferred_element_type=jnp.float32)
    y = y * scale_ref[...] + bias_ref[...] + res_ref[...].astype(jnp.float32)
    o_ref[...] = jnp.maximum(y, 0.0).astype(o_ref.dtype)


def conv1x1_bn_add_relu(x2d, w, scale, bias, res2d,
                        out_dtype=jnp.bfloat16, block_m=1024):
    M, Cin = x2d.shape
    Cout = w.shape[1]
    tm = _pick_tm(M, block_m)
    return pl.pallas_call(
        _conv1x1_bn_add_relu_kernel,
        out_shape=jax.ShapeDtypeStruct((M, Cout), out_dtype),
        grid=(M // tm,),
        in_specs=[
            pl.BlockSpec((tm, Cin), lambda i: (i, 0)),
            pl.BlockSpec((Cin, Cout), lambda i: (0, 0)),
            pl.BlockSpec((1, Cout), lambda i: (0, 0)),
            pl.BlockSpec((1, Cout), lambda i: (0, 0)),
            pl.BlockSpec((tm, Cout), lambda i: (i, 0)),
        ],
        out_specs=pl.BlockSpec((tm, Cout), lambda i: (i, 0)),
        compiler_params=pltpu.CompilerParams(
            dimension_semantics=("parallel",)),
    )(x2d, w, scale, bias, res2d)


# ----------------------------------------------------------------------------
# Parameter construction (deterministic)
# ----------------------------------------------------------------------------
def init_params(key, inplanes, planes, base_width=64, groups=1, expansion=4):
    width = int(planes * (base_width / 64.0)) * groups
    outc = planes * expansion
    ks = jax.random.split(key, 12)

    def bn_params(k, c):
        k1, k2, k3, k4 = jax.random.split(k, 4)
        gamma = 0.5 + jax.random.uniform(k1, (c,), jnp.float32)
        beta = 0.1 * jax.random.normal(k2, (c,), jnp.float32)
        mean = 0.1 * jax.random.normal(k3, (c,), jnp.float32)
        var = 0.5 + jax.random.uniform(k4, (c,), jnp.float32)
        return gamma, beta, mean, var

    # conv weights stored in PyTorch OIHW, converted to kernel layouts later
    w1_oihw = 0.1 * jax.random.normal(ks[0], (width, inplanes, 1, 1), jnp.float32)
    w2_oihw = 0.1 * jax.random.normal(ks[1], (width, width, 3, 3), jnp.float32)
    w3_oihw = 0.1 * jax.random.normal(ks[2], (outc, width, 1, 1), jnp.float32)

    return {
        "w1_oihw": w1_oihw, "w2_oihw": w2_oihw, "w3_oihw": w3_oihw,
        "bn1": bn_params(ks[3], width),
        "bn2": bn_params(ks[4], width),
        "bn3": bn_params(ks[5], outc),
        "width": width, "outc": outc,
    }


def bottleneck_forward(x_nchw, params):
    N, C, H, W = x_nchw.shape
    width = params["width"]
    outc = params["outc"]
    assert C == outc, "downsample is None -> inplanes must equal planes*expansion"

    x_nhwc = jnp.transpose(x_nchw, (0, 2, 3, 1))
    x_bf16 = x_nhwc.astype(jnp.bfloat16)       # MXU operands / residual in bf16
    M = N * H * W

    # weight layout conversion (bf16 MXU operands):
    #   1x1: OIHW -> (Cin, Cout)
    #   3x3: OIHW -> (dy, dx, Cin, Cout) -> (9*Cin, Cout)  (K-packed taps)
    w1 = jnp.transpose(params["w1_oihw"][:, :, 0, 0], (1, 0)).astype(jnp.bfloat16)
    w2 = jnp.transpose(params["w2_oihw"], (2, 3, 1, 0)) \
            .reshape(9 * width, width).astype(jnp.bfloat16)
    w3 = jnp.transpose(params["w3_oihw"][:, :, 0, 0], (1, 0)).astype(jnp.bfloat16)

    s1, b1 = fold_bn(*params["bn1"])
    s2, b2 = fold_bn(*params["bn2"])
    s3, b3 = fold_bn(*params["bn3"])

    # conv1 (1x1) + bn1 + relu                                  (M, width) bf16
    out1 = conv1x1_bn_relu(x_bf16.reshape(M, C), w1, s1, b1)
    # conv2 (3x3, stride 1, pad 1) + bn2 + relu          (N, H, W, width) bf16
    out2 = conv3x3_bn_relu(out1.reshape(N, H, W, width), w2, s2, b2)
    # conv3 (1x1) + bn3 + residual + relu                       (M, outc) bf16
    out3 = conv1x1_bn_add_relu(out2.reshape(M, width), w3, s3, b3,
                               x_bf16.reshape(M, C))

    return jnp.transpose(out3.reshape(N, H, W, outc),
                         (0, 3, 1, 2)).astype(jnp.float32)


# ----------------------------------------------------------------------------
# Pure-JAX reference (NCHW, lax.conv, f32) for verification
# ----------------------------------------------------------------------------
def bottleneck_reference(x_nchw, params):
    def bn(y, gamma, beta, mean, var):
        g = gamma[None, :, None, None]
        b = beta[None, :, None, None]
        m = mean[None, :, None, None]
        v = var[None, :, None, None]
        return g * (y - m) / jnp.sqrt(v + BN_EPS) + b

    dn = lax.conv_dimension_numbers(x_nchw.shape, params["w1_oihw"].shape,
                                    ("NCHW", "OIHW", "NCHW"))
    out = lax.conv_general_dilated(x_nchw, params["w1_oihw"], (1, 1), "VALID",
                                   dimension_numbers=dn,
                                   precision=lax.Precision.HIGHEST)
    out = jnp.maximum(bn(out, *params["bn1"]), 0.0)
    out = lax.conv_general_dilated(out, params["w2_oihw"], (1, 1), ((1, 1), (1, 1)),
                                   dimension_numbers=dn,
                                   precision=lax.Precision.HIGHEST)
    out = jnp.maximum(bn(out, *params["bn2"]), 0.0)
    out = lax.conv_general_dilated(out, params["w3_oihw"], (1, 1), "VALID",
                                   dimension_numbers=dn,
                                   precision=lax.Precision.HIGHEST)
    out = bn(out, *params["bn3"]) + x_nchw
    return jnp.maximum(out, 0.0)


if __name__ == "__main__":
    key = jax.random.PRNGKey(0)
    k_x, k_p = jax.random.split(key)

    # small shapes: batch=2, inplanes=16, planes=4 (-> width=4, out=16), 16x16
    N, inplanes, H, W = 2, 16, 16, 16
    planes = 4
    x = jax.random.normal(k_x, (N, inplanes, H, W), jnp.float32)

    params = init_params(k_p, inplanes, planes)

    out = jax.block_until_ready(bottleneck_forward(x, params))
    ref = jax.block_until_ready(bottleneck_reference(x, params))

    # bf16 MXU operands, bf16 residual/intermediate/output storage vs. an f32
    # HIGHEST reference: worst-case per-element error is a few 1e-2 absolute,
    # so 5e-2 gives comfortable margin while still catching real bugs.
    np.testing.assert_allclose(np.asarray(out), np.asarray(ref),
                               rtol=5e-2, atol=5e-2)

    print("KERNEL_OK")
</pallas_src>

<mosaic_0001>
module attributes {stable_mosaic.version = 11 : i64} {
  func.func @_conv1x1_bn_relu_kernel(%arg0: i32, %arg1: memref<256x16xbf16, #tpu.memory_space<vmem>>, %arg2: memref<16x4xbf16, #tpu.memory_space<vmem>>, %arg3: memref<1x4xf32, #tpu.memory_space<vmem>>, %arg4: memref<1x4xf32, #tpu.memory_space<vmem>>, %arg5: memref<256x4xbf16, #tpu.memory_space<vmem>>) attributes {dimension_semantics = [#tpu.dimension_semantics<parallel>], iteration_bounds = array<i64: 2>, scalar_prefetch = 0 : i64, scratch_operands = 0 : i64, tpu.core_type = #tpu.core_type<tc>, window_params = [{transform_indices = @transform_0, window_bounds = array<i64: 256, 16>}, {pipeline_mode = #tpu.pipeline_mode<synchronous>, transform_indices = @transform_1, window_bounds = array<i64: 16, 4>}, {pipeline_mode = #tpu.pipeline_mode<synchronous>, transform_indices = @transform_2, window_bounds = array<i64: 1, 4>}, {pipeline_mode = #tpu.pipeline_mode<synchronous>, transform_indices = @transform_3, window_bounds = array<i64: 1, 4>}, {transform_indices = @transform_4, window_bounds = array<i64: 256, 4>}]} {
    %c0 = arith.constant 0 : index
    %c0_0 = arith.constant 0 : index
    %0 = vector.load %arg1[%c0, %c0_0] : memref<256x16xbf16, #tpu.memory_space<vmem>>, vector<256x16xbf16>
    %c0_1 = arith.constant 0 : index
    %c0_2 = arith.constant 0 : index
    %1 = vector.load %arg2[%c0_1, %c0_2] : memref<16x4xbf16, #tpu.memory_space<vmem>>, vector<16x4xbf16>
    %cst = arith.constant dense<0.000000e+00> : vector<256x4xf32>
    %2 = tpu.matmul %0, %1, %cst {dimension_numbers = #tpu.dot_dimension_numbers<[1], [0], [0], [1], [0, 0, 1, 1], [], []>} : vector<256x16xbf16>, vector<16x4xbf16>, vector<256x4xf32> -> vector<256x4xf32>
    %c0_3 = arith.constant 0 : index
    %c0_4 = arith.constant 0 : index
    %3 = vector.load %arg3[%c0_3, %c0_4] : memref<1x4xf32, #tpu.memory_space<vmem>>, vector<1x4xf32>
    %4 = vector.broadcast %3 : vector<1x4xf32> to vector<256x4xf32>
    %5 = arith.mulf %2, %4 : vector<256x4xf32>
    %c0_5 = arith.constant 0 : index
    %c0_6 = arith.constant 0 : index
    %6 = vector.load %arg4[%c0_5, %c0_6] : memref<1x4xf32, #tpu.memory_space<vmem>>, vector<1x4xf32>
    %7 = vector.broadcast %6 : vector<1x4xf32> to vector<256x4xf32>
    %8 = arith.addf %5, %7 : vector<256x4xf32>
    %cst_7 = arith.constant 0.000000e+00 : f32
    %9 = vector.broadcast %cst_7 : f32 to vector<256x4xf32>
    %10 = arith.maximumf %8, %9 : vector<256x4xf32>
    %11 = arith.truncf %10 : vector<256x4xf32> to vector<256x4xbf16>
    %c0_8 = arith.constant 0 : index
    %c0_9 = arith.constant 0 : index
    %12 = vector.load %arg5[%c0_8, %c0_9] : memref<256x4xbf16, #tpu.memory_space<vmem>>, vector<256x4xbf16>
    tpu.vector_store %arg5[%c0_8, %c0_9], %11 {strides = array<i32>} : memref<256x4xbf16, #tpu.memory_space<vmem>>, vector<256x4xbf16>,
    return
  }
  func.func @transform_0(%arg0: i32) -> (i32, i32) {
    %c0_i32 = arith.constant 0 : i32
    %c0_i32_0 = arith.constant 0 : i32
    return %arg0, %c0_i32 : i32, i32
  }
  func.func @transform_1(%arg0: i32) -> (i32, i32) {
    %c0_i32 = arith.constant 0 : i32
    %c0_i32_0 = arith.constant 0 : i32
    %c0_i32_1 = arith.constant 0 : i32
    return %c0_i32, %c0_i32_0 : i32, i32
  }
  func.func @transform_2(%arg0: i32) -> (i32, i32) {
    %c0_i32 = arith.constant 0 : i32
    %c0_i32_0 = arith.constant 0 : i32
    %c0_i32_1 = arith.constant 0 : i32
    return %c0_i32, %c0_i32_0 : i32, i32
  }
  func.func @transform_3(%arg0: i32) -> (i32, i32) {
    %c0_i32 = arith.constant 0 : i32
    %c0_i32_0 = arith.constant 0 : i32
    %c0_i32_1 = arith.constant 0 : i32
    return %c0_i32, %c0_i32_0 : i32, i32
  }
  func.func @transform_4(%arg0: i32) -> (i32, i32) {
    %c0_i32 = arith.constant 0 : i32
    %c0_i32_0 = arith.constant 0 : i32
    return %arg0, %c0_i32 : i32, i32
  }
}

</mosaic_0001>

<bundles_post_ra>
// kernel: tpu_custom_call.1
= control target key start
LH: loop header
LB: loop body
LE: loop exit
PB: predicated region body
PF: predicated region fallthrough
CT: control target
= control target key end

     0   :  { %s1080_s15 = smov 0   ;;  %s1281_s0 = inlined_call_operand.vmem [shape: bf16[512,16], index: 0, kind: input, shape index: {}]   ;;  %s1282_s1 = inlined_call_operand.vmem [shape: bf16[16,4], index: 1, kind: input, shape index: {}]   ;;  %s1283_s2 = inlined_call_operand.vmem [shape: f32[1,4], index: 2, kind: input, shape index: {}]   ;;  %s1284_s3 = inlined_call_operand.vmem [shape: f32[1,4], index: 3, kind: input, shape index: {}]   ;;  %s1285_s4 = inlined_call_operand.vmem [shape: bf16[512,4], index: 4, kind: output, shape index: {}]  }
   0x1 LB: > { %s859_s16 = sadd.s32 4294967295, %s1053_s15   ;;  %p863_p0 = scmp.ge.s32.totalorder %s1053_s15, 1  ;;  %s1053_s15 = sphi %s1080_s15, %s14_s15  }
   0x2   : > { %p163_p1 = scmp.lt.s32.totalorder %s1053_s15, 3 }
   0x4   : > { %p164_p2 = pnand %p863_p0, %p163_p1 }
   0x5   : > { %v1030_v0 = vld [vmem:[%s1282_s1] sm:$0xff] (!%p164_p2)   ;;  %s864_s19 = sshll.u32 (!%p164_p2), %s859_s16, 5  ;;  %vm322_vm0 = vcmask (!%p164_p2), 130048   ;;  %vm770_vm1 = vcmask (!%p164_p2), 27648  }
   0x6   : > { %167 = sbr.rel (%p164_p2) target bundleno = 269 (0x10d), region = 36  ;;  %p190_p3 = scmp.lt.s32.totalorder (!%p164_p2), %s864_s19, 63  ;;  %986 = vmatprep.subr.bf16.mxu0 (!%p164_p2), %v1030_v0  ;;  %1020 = vmatprep.subr.bf16.mxu1 (!%p164_p2), %v1030_v0  ;;  %v1136_v17 = vld [vmem:[%s1283_s2] ss:$0 sm:$0xff] (!%p164_p2) }
   0x7   : > { %987 = vmatpush3.bf16.msra.mxu0 (!%p164_p2), %v1030_v0  ;;  %1021 = vmatpush3.bf16.msra.mxu1 (!%p164_p2), %v1030_v0  ;;  %v1141_v19 = vld [vmem:[%s1284_s3] ss:$0 sm:$0xff] (!%p164_p2) }
   0xd   : > { %s1287_s19 = smov (!%p190_p3, %s864_s19), 63 }
   0xe   : > { %s865_s20 = sshll.u32 %s1287_s19, 2 }
   0xf   : > { %s1099_s23 = scalar_lea.vmem %s1281_s0, %s865_s20  ;;  %s1161_s30 = scalar_lea.vmem %s1285_s4, %s865_s20 }
  0x10   : > { %v1031_v1 = vld [vmem:[%s1099_s23] sm:$0xff]   ;;  %v1033_v3 = vld [vmem:[%s1099_s23 + $0x8] sm:$0xff]   ;;  %v1035_v5 = vld [vmem:[%s1099_s23 + $0x10] sm:$0xff]  }
  0x11   : > { %v1032_v2 = vld [vmem:[%s1099_s23 + $0x40] sm:$0xff]   ;;  %988 = vmatprep.mubr.msk.bf16.mxu0 %vm322_vm0, %v1031_v1  ;;  %v1034_v4 = vld [vmem:[%s1099_s23 + $0x48] sm:$0xff]   ;;  %v1036_v6 = vld [vmem:[%s1099_s23 + $0x50] sm:$0xff]  }
  0x12   : > { %1004 = vmatprep.mubr.msk.bf16.mxu1 %vm322_vm0, %v1032_v2  ;;  %989 = vmatmul.mubr.msk.bf16.vlgmr.msra.gmra.mrb[0].mxu0 %vm322_vm0, %v1033_v3  ;;  %v1037_v7 = vld [vmem:[%s1099_s23 + $0x18] sm:$0xff]   ;;  %v1039_v9 = vld [vmem:[%s1099_s23 + $0x20] sm:$0xff]   ;;  %v1041_v11 = vld [vmem:[%s1099_s23 + $0x28] sm:$0xff]  }
  0x13   : > { %1005 = vmatmul.mubr.msk.bf16.vlgmr.msra.gmra.mrb[0].mxu1 %vm322_vm0, %v1034_v4  ;;  %992 = vmatprep.mubr.msk.bf16.mxu0 %vm322_vm0, %v1035_v5  ;;  %v1038_v8 = vld [vmem:[%s1099_s23 + $0x58] sm:$0xff]   ;;  %v1040_v10 = vld [vmem:[%s1099_s23 + $0x60] sm:$0xff]   ;;  %v1042_v12 = vld [vmem:[%s1099_s23 + $0x68] sm:$0xff]  }
  0x14   : > { %1008 = vmatprep.mubr.msk.bf16.mxu1 %vm322_vm0, %v1036_v6  ;;  %v1043_v13 = vld [vmem:[%s1099_s23 + $0x30] sm:$0xff]   ;;  %v1045_v15 = vld [vmem:[%s1099_s23 + $0x38] sm:$0xff]  }
  0x15   : > { %v1044_v14 = vld [vmem:[%s1099_s23 + $0x70] sm:$0xff]   ;;  %v1046_v16 = vld [vmem:[%s1099_s23 + $0x78] sm:$0xff]  }
  0x1a   : > { %993 = vmatmul.mubr.msk.bf16.gmra.mrb[4].mxu0 %vm322_vm0, %v1037_v7 }
  0x1b   : > { %1009 = vmatmul.mubr.msk.bf16.gmra.mrb[4].mxu1 %vm322_vm0, %v1038_v8  ;;  %996 = vmatprep.mubr.msk.bf16.mxu0 %vm322_vm0, %v1039_v9 }
  0x1c   : > { %1012 = vmatprep.mubr.msk.bf16.mxu1 %vm322_vm0, %v1040_v10 }
  0x22   : > { %997 = vmatmul.mubr.msk.bf16.gmra.mrb[8].mxu0 %vm322_vm0, %v1041_v11 }
  0x23   : > { %1013 = vmatmul.mubr.msk.bf16.gmra.mrb[8].mxu1 %vm322_vm0, %v1042_v12  ;;  %1000 = vmatprep.mubr.msk.bf16.mxu0 %vm322_vm0, %v1043_v13 }
  0x24   : > { %1016 = vmatprep.mubr.msk.bf16.mxu1 %vm322_vm0, %v1044_v14 }
  0x2a   : > { %1001 = vmatmul.mubr.msk.bf16.gmra.mrb[12].mxu0 %vm322_vm0, %v1045_v15 }
  0x2b   : > { %1017 = vmatmul.mubr.msk.bf16.gmra.mrb[12].mxu1 %vm322_vm0, %v1046_v16 }
  0xe5   : > { %v990_v18 = vpop.f32.mrb[0].mxu0 }
  0xe6   : > { %v541_v20 = vmul.f32 %v990_v18, %v1136_v17  ;;  %v1006_v21 = vpop.f32.mrb[0].mxu1  ;;  %v405_v22 = vpop.f32.mrb[1].mxu0 }
  0xe7   : > { %v557_v23 = vmul.f32 %v1006_v21, %v1136_v17  ;;  %v539_v24 = vmul.f32 %v1136_v17, %v405_v22  ;;  %v469_v25 = vpop.f32.mrb[1].mxu1  ;;  %v991_v26 = vpop.f32.mrb[2].mxu0 }
  0xe8   : > { %v580_v27 = vadd.f32 %v1141_v19, %v541_v20  ;;  %v555_v28 = vmul.f32 %v1136_v17, %v469_v25  ;;  %v542_v29 = vmul.f32 %v991_v26, %v1136_v17  ;;  %v1007_v30 = vpop.f32.mrb[2].mxu1  ;;  %v408_v31 = vpop.f32.mrb[3].mxu0 }
  0xe9   : > { %v596_v32 = vadd.f32 %v1141_v19, %v557_v23  ;;  %v578_v33 = vadd.f32 %v1141_v19, %v539_v24  ;;  %v558_v34 = vmul.f32 %v1007_v30, %v1136_v17  ;;  %v540_v35 = vmul.f32 %v1136_v17, %v408_v31  ;;  %v472_v36 = vpop.f32.mrb[3].mxu1 }
  0xea   : > { %v612_v37 = vmax.f32 %v580_v27, 0.0  ;;  %v594_v38 = vadd.f32 %v1141_v19, %v555_v28  ;;  %v581_v39 = vadd.f32 %v1141_v19, %v542_v29  ;;  %v556_v40 = vmul.f32 %v1136_v17, %v472_v36 }
  0xeb   : > { %v628_v41 = vmax.f32 %v596_v32, 0.0  ;;  %v610_v42 = vmax.f32 %v578_v33, 0.0  ;;  %v597_v43 = vadd.f32 %v1141_v19, %v558_v34  ;;  %v579_v44 = vadd.f32 %v1141_v19, %v540_v35 }
  0xec   : > { %v939_v45 = vpack.c.bf16 %v612_v37, %v612_v37  ;;  %v626_v46 = vmax.f32 %v594_v38, 0.0  ;;  %v613_v47 = vmax.f32 %v581_v39, 0.0  ;;  %v595_v48 = vadd.f32 %v1141_v19, %v556_v40 }
  0xed   : > { %v955_v49 = vpack.c.bf16 %v628_v41, %v628_v41  ;;  %v937_v50 = vpack.c.bf16 %v610_v42, %v610_v42  ;;  %v629_v51 = vmax.f32 %v597_v43, 0.0  ;;  %v611_v52 = vmax.f32 %v579_v44, 0.0  ;;  %v994_v53 = vpop.f32.mrb[4].mxu0 }
  0xee   : > { %773 = vst.msk [vmem:[%s1161_s30 + $0x8] sm:$0xf] %vm770_vm1, %v939_v45  ;;  %v953_v54 = vpack.c.bf16 %v626_v46, %v626_v46  ;;  %v940_v55 = vpack.c.bf16 %v613_v47, %v613_v47  ;;  %v627_v56 = vmax.f32 %v595_v48, 0.0  ;;  %v545_v57 = vmul.f32 %v994_v53, %v1136_v17  ;;  %v1010_v58 = vpop.f32.mrb[4].mxu1  ;;  %v421_v59 = vpop.f32.mrb[5].mxu0 }
  0xef   : > { %789 = vst.msk [vmem:[%s1161_s30 + $0x48] sm:$0xf] %vm770_vm1, %v955_v49  ;;  %771 = vst.msk [vmem:[%s1161_s30] sm:$0xf] %vm770_vm1, %v937_v50  ;;  %v956_v60 = vpack.c.bf16 %v629_v51, %v629_v51  ;;  %v938_v61 = vpack.c.bf16 %v611_v52, %v611_v52  ;;  %v561_v62 = vmul.f32 %v1010_v58, %v1136_v17  ;;  %v485_v0 = vpop.f32.mrb[5].mxu1  ;;  %v995_v1 = vpop.f32.mrb[6].mxu0 }
  0xf0   : > { %v543_v63 = vmul.f32 %v1136_v17, %v421_v59  ;;  %787 = vst.msk [vmem:[%s1161_s30 + $0x40] sm:$0xf] %vm770_vm1, %v953_v54  ;;  %774 = vst.msk [vmem:[%s1161_s30 + $0xc] sm:$0xf] %vm770_vm1, %v940_v55  ;;  %v954_v2 = vpack.c.bf16 %v627_v56, %v627_v56  ;;  %v584_v3 = vadd.f32 %v1141_v19, %v545_v57  ;;  %v1011_v6 = vpop.f32.mrb[6].mxu1  ;;  %v424_v7 = vpop.f32.mrb[7].mxu0 }
  0xf1   : > { %v559_v4 = vmul.f32 %v1136_v17, %v485_v0  ;;  %v546_v5 = vmul.f32 %v995_v1, %v1136_v17  ;;  %790 = vst.msk [vmem:[%s1161_s30 + $0x4c] sm:$0xf] %vm770_vm1, %v956_v60  ;;  %772 = vst.msk [vmem:[%s1161_s30 + $0x4] sm:$0xf] %vm770_vm1, %v938_v61  ;;  %v600_v8 = vadd.f32 %v1141_v19, %v561_v62  ;;  %v488_v12 = vpop.f32.mrb[7].mxu1 }
  0xf2   : > { %v582_v9 = vadd.f32 %v1141_v19, %v543_v63  ;;  %v562_v10 = vmul.f32 %v1011_v6, %v1136_v17  ;;  %v544_v11 = vmul.f32 %v1136_v17, %v424_v7  ;;  %788 = vst.msk [vmem:[%s1161_s30 + $0x44] sm:$0xf] %vm770_vm1, %v954_v2  ;;  %v616_v13 = vmax.f32 %v584_v3, 0.0 }
  0xf3   : > { %v598_v14 = vadd.f32 %v1141_v19, %v559_v4  ;;  %v585_v15 = vadd.f32 %v1141_v19, %v546_v5  ;;  %v560_v16 = vmul.f32 %v1136_v17, %v488_v12  ;;  %v632_v18 = vmax.f32 %v600_v8, 0.0 }
  0xf4   : > { %v614_v20 = vmax.f32 %v582_v9, 0.0  ;;  %v601_v21 = vadd.f32 %v1141_v19, %v562_v10  ;;  %v583_v22 = vadd.f32 %v1141_v19, %v544_v11  ;;  %v943_v23 = vpack.c.bf16 %v616_v13, %v616_v13 }
  0xf5   : > { %v630_v24 = vmax.f32 %v598_v14, 0.0  ;;  %v617_v25 = vmax.f32 %v585_v15, 0.0  ;;  %v599_v26 = vadd.f32 %v1141_v19, %v560_v16  ;;  %v959_v27 = vpack.c.bf16 %v632_v18, %v632_v18  ;;  %v998_v31 = vpop.f32.mrb[8].mxu0 }
  0xf6   : > { %v941_v28 = vpack.c.bf16 %v614_v20, %v614_v20  ;;  %v633_v29 = vmax.f32 %v601_v21, 0.0  ;;  %v615_v30 = vmax.f32 %v583_v22, 0.0  ;;  %777 = vst.msk [vmem:[%s1161_s30 + $0x18] sm:$0xf] %vm770_vm1, %v943_v23  ;;  %v549_v35 = vmul.f32 %v998_v31, %v1136_v17  ;;  %v1014_v36 = vpop.f32.mrb[8].mxu1  ;;  %v437_v37 = vpop.f32.mrb[9].mxu0 }
  0xf7   : > { %v957_v32 = vpack.c.bf16 %v630_v24, %v630_v24  ;;  %v944_v33 = vpack.c.bf16 %v617_v25, %v617_v25  ;;  %v631_v34 = vmax.f32 %v599_v26, 0.0  ;;  %793 = vst.msk [vmem:[%s1161_s30 + $0x58] sm:$0xf] %vm770_vm1, %v959_v27  ;;  %v565_v40 = vmul.f32 %v1014_v36, %v1136_v17  ;;  %v501_v42 = vpop.f32.mrb[9].mxu1  ;;  %v999_v43 = vpop.f32.mrb[10].mxu0 }
  0xf8   : > { %775 = vst.msk [vmem:[%s1161_s30 + $0x10] sm:$0xf] %vm770_vm1, %v941_v28  ;;  %v960_v38 = vpack.c.bf16 %v633_v29, %v633_v29  ;;  %v942_v39 = vpack.c.bf16 %v615_v30, %v615_v30  ;;  %v547_v41 = vmul.f32 %v1136_v17, %v437_v37  ;;  %v588_v45 = vadd.f32 %v1141_v19, %v549_v35  ;;  %v1015_v48 = vpop.f32.mrb[10].mxu1  ;;  %v440_v49 = vpop.f32.mrb[11].mxu0 }
  0xf9   : > { %791 = vst.msk [vmem:[%s1161_s30 + $0x50] sm:$0xf] %vm770_vm1, %v957_v32  ;;  %778 = vst.msk [vmem:[%s1161_s30 + $0x1c] sm:$0xf] %vm770_vm1, %v944_v33  ;;  %v958_v44 = vpack.c.bf16 %v631_v34, %v631_v34  ;;  %v563_v46 = vmul.f32 %v1136_v17, %v501_v42  ;;  %v550_v47 = vmul.f32 %v999_v43, %v1136_v17  ;;  %v504_v54 = vpop.f32.mrb[11].mxu1 }
  0xfa   : > { %794 = vst.msk [vmem:[%s1161_s30 + $0x5c] sm:$0xf] %vm770_vm1, %v960_v38  ;;  %776 = vst.msk [vmem:[%s1161_s30 + $0x14] sm:$0xf] %vm770_vm1, %v942_v39  ;;  %v604_v50 = vadd.f32 %v1141_v19, %v565_v40  ;;  %v586_v51 = vadd.f32 %v1141_v19, %v547_v41  ;;  %v566_v52 = vmul.f32 %v1015_v48, %v1136_v17  ;;  %v620_v55 = vmax.f32 %v588_v45, 0.0 }
  0xfb   : > { %v548_v53 = vmul.f32 %v1136_v17, %v440_v49  ;;  %792 = vst.msk [vmem:[%s1161_s30 + $0x54] sm:$0xf] %vm770_vm1, %v958_v44  ;;  %v602_v56 = vadd.f32 %v1141_v19, %v563_v46  ;;  %v589_v57 = vadd.f32 %v1141_v19, %v550_v47  ;;  %v564_v58 = vmul.f32 %v1136_v17, %v504_v54 }
  0xfc   : > { %v636_v59 = vmax.f32 %v604_v50, 0.0  ;;  %v618_v60 = vmax.f32 %v586_v51, 0.0  ;;  %v605_v61 = vadd.f32 %v1141_v19, %v566_v52  ;;  %v947_v63 = vpack.c.bf16 %v620_v55, %v620_v55 }
  0xfd   : > { %v587_v62 = vadd.f32 %v1141_v19, %v548_v53  ;;  %v634_v0 = vmax.f32 %v602_v56, 0.0  ;;  %v621_v1 = vmax.f32 %v589_v57, 0.0  ;;  %v603_v2 = vadd.f32 %v1141_v19, %v564_v58  ;;  %v1002_v7 = vpop.f32.mrb[12].mxu0 }
  0xfe   : > { %v963_v3 = vpack.c.bf16 %v636_v59, %v636_v59  ;;  %v945_v4 = vpack.c.bf16 %v618_v60, %v618_v60  ;;  %v637_v5 = vmax.f32 %v605_v61, 0.0  ;;  %781 = vst.msk [vmem:[%s1161_s30 + $0x28] sm:$0xf] %vm770_vm1, %v947_v63  ;;  %v553_v11 = vmul.f32 %v1002_v7, %v1136_v17  ;;  %v1018_v12 = vpop.f32.mrb[12].mxu1  ;;  %v453_v13 = vpop.f32.mrb[13].mxu0 }
  0xff   : > { %v619_v6 = vmax.f32 %v587_v62, 0.0  ;;  %v961_v8 = vpack.c.bf16 %v634_v0, %v634_v0  ;;  %v948_v9 = vpack.c.bf16 %v621_v1, %v621_v1  ;;  %v635_v10 = vmax.f32 %v603_v2, 0.0  ;;  %v517_v20 = vpop.f32.mrb[13].mxu1  ;;  %v1003_v21 = vpop.f32.mrb[14].mxu0 }
 0x100   : > { %797 = vst.msk [vmem:[%s1161_s30 + $0x68] sm:$0xf] %vm770_vm1, %v963_v3  ;;  %779 = vst.msk [vmem:[%s1161_s30 + $0x20] sm:$0xf] %vm770_vm1, %v945_v4  ;;  %v964_v14 = vpack.c.bf16 %v637_v5, %v637_v5  ;;  %v569_v16 = vmul.f32 %v1018_v12, %v1136_v17  ;;  %v551_v18 = vmul.f32 %v1136_v17, %v453_v13  ;;  %v1019_v26 = vpop.f32.mrb[14].mxu1  ;;  %v456_v27 = vpop.f32.mrb[15].mxu0 }
 0x101   : > { %v946_v15 = vpack.c.bf16 %v619_v6, %v619_v6  ;;  %795 = vst.msk [vmem:[%s1161_s30 + $0x60] sm:$0xf] %vm770_vm1, %v961_v8  ;;  %782 = vst.msk [vmem:[%s1161_s30 + $0x2c] sm:$0xf] %vm770_vm1, %v948_v9  ;;  %v962_v22 = vpack.c.bf16 %v635_v10, %v635_v10  ;;  %v592_v23 = vadd.f32 %v1141_v19, %v553_v11  ;;  %v520_v32 = vpop.f32.mrb[15].mxu1 }
 0x102   : > { %v567_v24 = vmul.f32 %v1136_v17, %v517_v20  ;;  %v554_v25 = vmul.f32 %v1003_v21, %v1136_v17  ;;  %798 = vst.msk [vmem:[%s1161_s30 + $0x6c] sm:$0xf] %vm770_vm1, %v964_v14  ;;  %v608_v28 = vadd.f32 %v1141_v19, %v569_v16  ;;  %v590_v29 = vadd.f32 %v1141_v19, %v551_v18 }
 0x103   : > { %780 = vst.msk [vmem:[%s1161_s30 + $0x24] sm:$0xf] %vm770_vm1, %v946_v15  ;;  %v570_v30 = vmul.f32 %v1019_v26, %v1136_v17  ;;  %v552_v31 = vmul.f32 %v1136_v17, %v456_v27  ;;  %796 = vst.msk [vmem:[%s1161_s30 + $0x64] sm:$0xf] %vm770_vm1, %v962_v22  ;;  %v624_v33 = vmax.f32 %v592_v23, 0.0  ;;  %v568_v36 = vmul.f32 %v1136_v17, %v520_v32 }
 0x104   : > { %v606_v34 = vadd.f32 %v1141_v19, %v567_v24  ;;  %v593_v35 = vadd.f32 %v1141_v19, %v554_v25  ;;  %v640_v37 = vmax.f32 %v608_v28, 0.0  ;;  %v622_v38 = vmax.f32 %v590_v29, 0.0 }
 0x105   : > { %v609_v39 = vadd.f32 %v1141_v19, %v570_v30  ;;  %v591_v40 = vadd.f32 %v1141_v19, %v552_v31  ;;  %v951_v41 = vpack.c.bf16 %v624_v33, %v624_v33  ;;  %v607_v44 = vadd.f32 %v1141_v19, %v568_v36 }
 0x106   : > { %v638_v42 = vmax.f32 %v606_v34, 0.0  ;;  %v625_v43 = vmax.f32 %v593_v35, 0.0  ;;  %v967_v45 = vpack.c.bf16 %v640_v37, %v640_v37  ;;  %v949_v46 = vpack.c.bf16 %v622_v38, %v622_v38 }
 0x107   : > { %v641_v17 = vmax.f32 %v609_v39, 0.0  ;;  %v623_v47 = vmax.f32 %v591_v40, 0.0  ;;  %785 = vst.msk [vmem:[%s1161_s30 + $0x38] sm:$0xf] %vm770_vm1, %v951_v41  ;;  %v639_v50 = vmax.f32 %v607_v44, 0.0 }
 0x108   : > { %v965_v48 = vpack.c.bf16 %v638_v42, %v638_v42  ;;  %v952_v49 = vpack.c.bf16 %v625_v43, %v625_v43  ;;  %801 = vst.msk [vmem:[%s1161_s30 + $0x78] sm:$0xf] %vm770_vm1, %v967_v45  ;;  %783 = vst.msk [vmem:[%s1161_s30 + $0x30] sm:$0xf] %vm770_vm1, %v949_v46 }
 0x109   : > { %v968_v51 = vpack.c.bf16 %v641_v17, %v641_v17  ;;  %v950_v52 = vpack.c.bf16 %v623_v47, %v623_v47  ;;  %v966_v19 = vpack.c.bf16 %v639_v50, %v639_v50 }
 0x10a   : > { %799 = vst.msk [vmem:[%s1161_s30 + $0x70] sm:$0xf] %vm770_vm1, %v965_v48  ;;  %786 = vst.msk [vmem:[%s1161_s30 + $0x3c] sm:$0xf] %vm770_vm1, %v952_v49 }
 0x10b   : > { %802 = vst.msk [vmem:[%s1161_s30 + $0x7c] sm:$0xf] %vm770_vm1, %v968_v51  ;;  %784 = vst.msk [vmem:[%s1161_s30 + $0x34] sm:$0xf] %vm770_vm1, %v950_v52 }
 0x10c   : > { %800 = vst.msk [vmem:[%s1161_s30 + $0x74] sm:$0xf] %vm770_vm1, %v966_v19 }
 0x10d PF: > { %s14_s15 = sadd.s32 1, %s1053_s15  }
 0x10e   : > { %p11_p4 = scmp.ge.s32.totalorder %s14_s15, 4  }
 0x110   :  { %13 = sbr.rel (!%p11_p4) target bundleno = 1 (0x1), region = 66 }

</bundles_post_ra>
